<compile_context>
chip_gen: v6e
topology: v6e:2x2x1
jax: 0.10.0
libtpu: 0.0.40
codegen_flags: <defaults>
</compile_context>

<pallas_src>
import functools

import jax
import jax.numpy as jnp
from jax import lax
from jax.experimental import pallas as pl
from jax.experimental.pallas import tpu as pltpu


def _window_attention_kernel(heads, cph, window,
                             x_ref, wqkv_ref, bqkv_ref, band_ref, mask_ref,
                             o_ref):
    """One batch-block (flattened to N tokens) per grid step.  Fused QKV
    projection, banded per-head scores, softmax, and the weighted value sum all
    run on the MXU with bf16 inputs and f32 accumulation."""
    fmax = float(jnp.finfo(jnp.float32).max)   # same fill magnitude as torch.finfo(A.dtype).max
    chans = heads * cph
    scale = cph ** -0.5

    x = x_ref[0]                                                       # (N, C) bf16

    # Fused QKV projection: one (N, C) x (C, 3C) bf16 MXU matmul + one f32 bias add.
    qkv = jnp.dot(x, wqkv_ref[...],
                  preferred_element_type=jnp.float32) + bqkv_ref[...]  # (N, 3C) f32

    # Grid-invariant band/same-batch mask (0/1 f32) AND per-step key validity.
    band = band_ref[...]                                               # (N, N)
    valid = band * mask_ref[0]                                         # (N, N) 0/1
    bias = (valid - 1.0) * fmax                                        # 0 valid / -fmax invalid
    # Exact torch semantics for fully-masked rows: softmax over `window` entries
    # that are all -fmax -> uniform 1/window; out-of-range band positions would
    # multiply torch's zero-padded V, and are excluded from `band` here.
    p_unif = band * (1.0 / window)                                     # (N, N)

    for n in range(heads):                                             # tiny & static
        lo = n * cph
        q_n = (qkv[:, lo:lo + cph] * scale).astype(jnp.bfloat16)               # (N, h)
        k_n = qkv[:, chans + lo:chans + lo + cph].astype(jnp.bfloat16)          # (N, h)
        v_n = qkv[:, 2 * chans + lo:2 * chans + lo + cph].astype(jnp.bfloat16)  # (N, h)

        # Banded scores on the MXU (rhs-transposed matmul): s[q, k] = q_n[q] . k_n[k]
        s = lax.dot_general(q_n, k_n, (((1,), (1,)), ((), ())),
                            preferred_element_type=jnp.float32)        # (N, N) f32
        a = s + bias
        m = jnp.max(a, axis=-1, keepdims=True)                         # (N, 1)
        any_valid = m > (-0.5 * fmax)                                  # row has a live key
        e = jnp.exp(a - m)
        p = e * pl.reciprocal(jnp.sum(e, axis=-1, keepdims=True), approx=True)
        p = jnp.where(any_valid, p, p_unif)

        # Weighted value sum on the MXU; store this head's slice immediately.
        z_n = jnp.dot(p.astype(jnp.bfloat16), v_n,
                      preferred_element_type=jnp.float32)              # (N, h)
        o_ref[0, :, lo:lo + cph] = z_n.astype(o_ref.dtype)


def _chip_caps():
    """Token-block cap and minimum grid steps from the attached TPU generation."""
    try:
        kind = jax.devices()[0].device_kind.lower()
    except Exception:
        kind = ""
    tok_cap = 128 if "v5" in kind else 256     # v5e: 4x128^2 MXU; v6e/v7x: 2x256^2
    min_steps = 2 if "7" in kind else 1        # v7x: 2 TensorCores per chip
    return tok_cap, min_steps


def window_attention(x, mask, params, *, heads, window, batch_block=None):
    """x: (B, C, S) float32, mask: (B, S) bool. Returns (B, S, C) matching the
    PyTorch WindowAttention.forward output (including its nonstandard final
    transpose/reshape)."""
    B, C, S = x.shape
    assert window % 2 == 1, "Window size should be an odd integer."
    assert C % heads == 0
    cph = C // heads
    w = (window - 1) // 2

    if batch_block is None:
        tok_cap, min_steps = _chip_caps()
        batch_block = 1
        for d in range(1, B + 1):
            if B % d == 0 and d * S <= tok_cap and B // d >= min_steps:
                batch_block = d
        # TODO(synk): if S itself exceeds tok_cap the dense (N,N) mask/softmax
        # grows quadratically; a query-block x diagonal-key-block grid would be
        # the right structure for long sequences.
    assert B % batch_block == 0
    nb = B // batch_block
    N = batch_block * S

    # bf16 MXU operands (f32 accumulation inside the kernel); halves x/W DMA.
    xT = jnp.transpose(x, (0, 2, 1)).reshape(nb, N, C).astype(jnp.bfloat16)
    mask_flat = mask.astype(jnp.float32).reshape(nb, 1, N)

    # Fused QKV weights / bias (Linear: x @ W^T + b).
    wqkv = jnp.concatenate(
        [params["wq"].T, params["wk"].T, params["wv"].T], axis=1).astype(jnp.bfloat16)
    bqkv = jnp.concatenate(
        [params["bq"], params["bk"], params["bv"]]).reshape(1, 3 * C).astype(jnp.float32)

    # Grid-invariant band + same-batch-element mask for the flattened token axis.
    tok = jnp.arange(N, dtype=jnp.int32)
    row, col = tok[:, None], tok[None, :]
    band = ((jnp.abs(row - col) <= w) & ((row // S) == (col // S))).astype(jnp.float32)

    kernel = functools.partial(_window_attention_kernel, heads, cph, window)

    # TODO(synk): on v5e (single store slot) the (N, C<128) output store is a
    # masked partial store; folding token rows into 128-lane slabs via out_specs
    # would make it unmasked, but the win is ~16 KiB/step (lowest priority).
    z_std = pl.pallas_call(
        kernel,
        out_shape=jax.ShapeDtypeStruct((nb, N, C), jnp.float32),
        grid=(nb,),
        in_specs=[
            pl.BlockSpec((1, N, C), lambda b: (b, 0, 0)),      # x batch block (bf16)
            pl.BlockSpec((C, 3 * C), lambda b: (0, 0)),        # fused W^T (bf16, resident)
            pl.BlockSpec((1, 3 * C), lambda b: (0, 0)),        # fused bias (f32, resident)
            pl.BlockSpec((N, N), lambda b: (0, 0)),            # band mask (f32, resident)
            pl.BlockSpec((1, 1, N), lambda b: (b, 0, 0)),      # key-validity mask
        ],
        out_specs=pl.BlockSpec((1, N, C), lambda b: (b, 0, 0)),
        compiler_params=pltpu.CompilerParams(
            dimension_semantics=("parallel",)),                # batch axis: independent
    )(xT, wqkv, bqkv, band, mask_flat)

    # Undo batch flattening, then reproduce the module's (nonstandard) final
    # combine: z (B,S,nh,h) -> transpose(1,2) -> reshape(B, -1, nh*h).
    z = z_std.reshape(B, S, heads, cph)
    z = jnp.transpose(z, (0, 2, 1, 3)).reshape(B, S, heads * cph)
    return z


def window_attention_ref(x, mask, params, *, heads, window):
    """Pure-JAX f32 reference mirroring the PyTorch forward (for verification)."""
    B, C, S = x.shape
    cph = C // heads
    w = (window - 1) // 2
    xt = jnp.transpose(x, (0, 2, 1))
    q = (xt @ params["wq"].T + params["bq"]).reshape(B, S, heads, cph) * (cph ** -0.5)
    k = (xt @ params["wk"].T + params["bk"]).reshape(B, S, heads, cph)
    v = (xt @ params["wv"].T + params["bv"]).reshape(B, S, heads, cph)
    kp = jnp.pad(k, ((0, 0), (w, w), (0, 0), (0, 0)))
    vp = jnp.pad(v, ((0, 0), (w, w), (0, 0), (0, 0)))
    mp = jnp.pad(mask, ((0, 0), (w, w)))
    A = jnp.stack([jnp.einsum("bqnh,bqnh->bqn", q, kp[:, kk:kk + S])
                   for kk in range(window)], axis=2)                 # (B,S,win,nh)
    munf = jnp.stack([mp[:, kk:kk + S] for kk in range(window)], axis=2)
    A = jnp.where(munf[..., None], A, -jnp.finfo(jnp.float32).max)
    A = jax.nn.softmax(A, axis=-2)
    vunf = jnp.stack([vp[:, kk:kk + S] for kk in range(window)], axis=2)
    z = jnp.einsum("bqkn,bqknh->bqnh", A, vunf)
    return jnp.transpose(z, (0, 2, 1, 3)).reshape(B, S, heads * cph)


if __name__ == "__main__":
    heads, channels, window = 4, 32, 5
    B, S = 2, 16

    key = jax.random.PRNGKey(0)
    ks = jax.random.split(key, 8)
    params = {
        "wq": jax.random.normal(ks[0], (channels, channels), jnp.float32) * 0.1,
        "bq": jax.random.normal(ks[1], (channels,), jnp.float32) * 0.1,
        "wk": jax.random.normal(ks[2], (channels, channels), jnp.float32) * 0.1,
        "bk": jax.random.normal(ks[3], (channels,), jnp.float32) * 0.1,
        "wv": jax.random.normal(ks[4], (channels, channels), jnp.float32) * 0.1,
        "bv": jax.random.normal(ks[5], (channels,), jnp.float32) * 0.1,
    }
    x = jax.random.normal(ks[6], (B, channels, S), jnp.float32)
    mask = jax.random.uniform(ks[7], (B, S)) > 0.3                   # bool (B, S)

    out = window_attention(x, mask, params, heads=heads, window=window)
    out = jax.block_until_ready(out)

    ref = jax.block_until_ready(
        window_attention_ref(x, mask, params, heads=heads, window=window))
    assert out.shape == (B, S, channels)
    # bf16 MXU operands + approx reciprocal -> ~1e-2 abs error vs the f32 reference.
    assert jnp.allclose(out, ref, atol=3e-2, rtol=3e-2), "mismatch vs reference"

    print("KERNEL_OK")
</pallas_src>

<mosaic_0001>
module attributes {stable_mosaic.version = 11 : i64} {
  func.func @_window_attention_kernel(%arg0: i32, %arg1: memref<1x32x32xbf16, #tpu.memory_space<vmem>>, %arg2: memref<32x96xbf16, #tpu.memory_space<vmem>>, %arg3: memref<1x96xf32, #tpu.memory_space<vmem>>, %arg4: memref<32x32xf32, #tpu.memory_space<vmem>>, %arg5: memref<1x1x32xf32, #tpu.memory_space<vmem>>, %arg6: memref<1x32x32xf32, #tpu.memory_space<vmem>>) attributes {dimension_semantics = [#tpu.dimension_semantics<parallel>], iteration_bounds = array<i64: 1>, scalar_prefetch = 0 : i64, scratch_operands = 0 : i64, tpu.core_type = #tpu.core_type<tc>, window_params = [{transform_indices = @transform_0, window_bounds = array<i64: 1, 32, 32>}, {pipeline_mode = #tpu.pipeline_mode<synchronous>, transform_indices = @transform_1, window_bounds = array<i64: 32, 96>}, {pipeline_mode = #tpu.pipeline_mode<synchronous>, transform_indices = @transform_2, window_bounds = array<i64: 1, 96>}, {pipeline_mode = #tpu.pipeline_mode<synchronous>, transform_indices = @transform_3, window_bounds = array<i64: 32, 32>}, {transform_indices = @transform_4, window_bounds = array<i64: 1, 1, 32>}, {transform_indices = @transform_5, window_bounds = array<i64: 1, 32, 32>}]} {
    %c0 = arith.constant 0 : index
    %c0_0 = arith.constant 0 : index
    %c0_1 = arith.constant 0 : index
    %0 = vector.load %arg1[%c0, %c0_0, %c0_1] : memref<1x32x32xbf16, #tpu.memory_space<vmem>>, vector<1x32x32xbf16>
    %1 = vector.shape_cast %0 : vector<1x32x32xbf16> to vector<32x32xbf16>
    %c0_2 = arith.constant 0 : index
    %c0_3 = arith.constant 0 : index
    %2 = vector.load %arg2[%c0_2, %c0_3] : memref<32x96xbf16, #tpu.memory_space<vmem>>, vector<32x96xbf16>
    %cst = arith.constant dense<0.000000e+00> : vector<32x96xf32>
    %3 = tpu.matmul %1, %2, %cst {dimension_numbers = #tpu.dot_dimension_numbers<[1], [0], [0], [1], [0, 0, 1, 1], [], []>} : vector<32x32xbf16>, vector<32x96xbf16>, vector<32x96xf32> -> vector<32x96xf32>
    %c0_4 = arith.constant 0 : index
    %c0_5 = arith.constant 0 : index
    %4 = vector.load %arg3[%c0_4, %c0_5] : memref<1x96xf32, #tpu.memory_space<vmem>>, vector<1x96xf32>
    %5 = vector.broadcast %4 : vector<1x96xf32> to vector<32x96xf32>
    %6 = arith.addf %3, %5 : vector<32x96xf32>
    %c0_6 = arith.constant 0 : index
    %c0_7 = arith.constant 0 : index
    %7 = vector.load %arg4[%c0_6, %c0_7] : memref<32x32xf32, #tpu.memory_space<vmem>>, vector<32x32xf32>
    %c0_8 = arith.constant 0 : index
    %c0_9 = arith.constant 0 : index
    %c0_10 = arith.constant 0 : index
    %8 = vector.load %arg5[%c0_8, %c0_9, %c0_10] : memref<1x1x32xf32, #tpu.memory_space<vmem>>, vector<1x1x32xf32>
    %9 = vector.shape_cast %8 : vector<1x1x32xf32> to vector<1x32xf32>
    %10 = vector.broadcast %9 : vector<1x32xf32> to vector<32x32xf32>
    %11 = arith.mulf %7, %10 : vector<32x32xf32>
    %cst_11 = arith.constant 1.000000e+00 : f32
    %12 = vector.broadcast %cst_11 : f32 to vector<32x32xf32>
    %13 = arith.subf %11, %12 : vector<32x32xf32>
    %cst_12 = arith.constant 3.40282347E+38 : f32
    %14 = vector.broadcast %cst_12 : f32 to vector<32x32xf32>
    %15 = arith.mulf %13, %14 : vector<32x32xf32>
    %cst_13 = arith.constant 2.000000e-01 : f32
    %16 = vector.broadcast %cst_13 : f32 to vector<32x32xf32>
    %17 = arith.mulf %7, %16 : vector<32x32xf32>
    %18 = vector.extract_strided_slice %6 {offsets = [0, 0], sizes = [32, 8], strides = [1, 1]} : vector<32x96xf32> to vector<32x8xf32>
    %cst_14 = arith.constant 0.353553385 : f32
    %19 = vector.broadcast %cst_14 : f32 to vector<32x8xf32>
    %20 = arith.mulf %18, %19 : vector<32x8xf32>
    %21 = arith.truncf %20 : vector<32x8xf32> to vector<32x8xbf16>
    %22 = vector.extract_strided_slice %6 {offsets = [0, 32], sizes = [32, 8], strides = [1, 1]} : vector<32x96xf32> to vector<32x8xf32>
    %23 = arith.truncf %22 : vector<32x8xf32> to vector<32x8xbf16>
    %24 = vector.extract_strided_slice %6 {offsets = [0, 64], sizes = [32, 8], strides = [1, 1]} : vector<32x96xf32> to vector<32x8xf32>
    %25 = arith.truncf %24 : vector<32x8xf32> to vector<32x8xbf16>
    %cst_15 = arith.constant dense<0.000000e+00> : vector<32x32xf32>
    %26 = tpu.matmul %21, %23, %cst_15 {dimension_numbers = #tpu.dot_dimension_numbers<[1], [1], [0], [0], [0, 0, 1, 0], [], []>} : vector<32x8xbf16>, vector<32x8xbf16>, vector<32x32xf32> -> vector<32x32xf32>
    %27 = arith.addf %26, %15 : vector<32x32xf32>
    %cst_16 = arith.constant dense<0xFF800000> : vector<32xf32>
    %28 = vector.multi_reduction <maximumf>, %27, %cst_16 [1] : vector<32x32xf32> to vector<32xf32>
    %29 = vector.shape_cast %28 : vector<32xf32> to vector<32x1xf32>
    %cst_17 = arith.constant -1.70141173E+38 : f32
    %30 = vector.broadcast %cst_17 : f32 to vector<32x1xf32>
    %31 = arith.cmpf ogt, %29, %30 : vector<32x1xf32>
    %32 = vector.broadcast %29 : vector<32x1xf32> to vector<32x32xf32>
    %33 = arith.subf %27, %32 : vector<32x32xf32>
    %34 = math.exp %33 : vector<32x32xf32>
    %cst_18 = arith.constant dense<0.000000e+00> : vector<32xf32>
    %35 = vector.multi_reduction <add>, %34, %cst_18 [1] : vector<32x32xf32> to vector<32xf32>
    %36 = vector.shape_cast %35 : vector<32xf32> to vector<32x1xf32>
    %37 = tpu.reciprocal %36 {approx = true} : vector<32x1xf32> -> vector<32x1xf32>
    %38 = vector.broadcast %37 : vector<32x1xf32> to vector<32x32xf32>
    %39 = arith.mulf %34, %38 : vector<32x32xf32>
    %40 = vector.shape_cast %31 : vector<32x1xi1> to vector<32x1xi1>
    %41 = vector.broadcast %40 : vector<32x1xi1> to vector<32x32xi1>
    %42 = arith.select %41, %39, %17 : vector<32x32xi1>, vector<32x32xf32>
    %43 = arith.truncf %42 : vector<32x32xf32> to vector<32x32xbf16>
    %cst_19 = arith.constant dense<0.000000e+00> : vector<32x8xf32>
    %44 = tpu.matmul %43, %25, %cst_19 {dimension_numbers = #tpu.dot_dimension_numbers<[1], [0], [0], [1], [0, 0, 1, 1], [], []>} : vector<32x32xbf16>, vector<32x8xbf16>, vector<32x8xf32> -> vector<32x8xf32>
    %c0_20 = arith.constant 0 : index
    %c0_21 = arith.constant 0 : index
    %c0_22 = arith.constant 0 : index
    %45 = vector.load %arg6[%c0_20, %c0_21, %c0_22] : memref<1x32x32xf32, #tpu.memory_space<vmem>>, vector<1x32x8xf32>
    %46 = vector.shape_cast %45 : vector<1x32x8xf32> to vector<32x8xf32>
    %47 = vector.shape_cast %44 : vector<32x8xf32> to vector<1x32x8xf32>
    tpu.vector_store %arg6[%c0_20, %c0_21, %c0_22], %47 {strides = array<i32>} : memref<1x32x32xf32, #tpu.memory_space<vmem>>, vector<1x32x8xf32>,
    %48 = vector.extract_strided_slice %6 {offsets = [0, 8], sizes = [32, 8], strides = [1, 1]} : vector<32x96xf32> to vector<32x8xf32>
    %cst_23 = arith.constant 0.353553385 : f32
    %49 = vector.broadcast %cst_23 : f32 to vector<32x8xf32>
    %50 = arith.mulf %48, %49 : vector<32x8xf32>
    %51 = arith.truncf %50 : vector<32x8xf32> to vector<32x8xbf16>
    %52 = vector.extract_strided_slice %6 {offsets = [0, 40], sizes = [32, 8], strides = [1, 1]} : vector<32x96xf32> to vector<32x8xf32>
    %53 = arith.truncf %52 : vector<32x8xf32> to vector<32x8xbf16>
    %54 = vector.extract_strided_slice %6 {offsets = [0, 72], sizes = [32, 8], strides = [1, 1]} : vector<32x96xf32> to vector<32x8xf32>
    %55 = arith.truncf %54 : vector<32x8xf32> to vector<32x8xbf16>
    %cst_24 = arith.constant dense<0.000000e+00> : vector<32x32xf32>
    %56 = tpu.matmul %51, %53, %cst_24 {dimension_numbers = #tpu.dot_dimension_numbers<[1], [1], [0], [0], [0, 0, 1, 0], [], []>} : vector<32x8xbf16>, vector<32x8xbf16>, vector<32x32xf32> -> vector<32x32xf32>
    %57 = arith.addf %56, %15 : vector<32x32xf32>
    %cst_25 = arith.constant dense<0xFF800000> : vector<32xf32>
    %58 = vector.multi_reduction <maximumf>, %57, %cst_25 [1] : vector<32x32xf32> to vector<32xf32>
    %59 = vector.shape_cast %58 : vector<32xf32> to vector<32x1xf32>
    %cst_26 = arith.constant -1.70141173E+38 : f32
    %60 = vector.broadcast %cst_26 : f32 to vector<32x1xf32>
    %61 = arith.cmpf ogt, %59, %60 : vector<32x1xf32>
    %62 = vector.broadcast %59 : vector<32x1xf32> to vector<32x32xf32>
    %63 = arith.subf %57, %62 : vector<32x32xf32>
    %64 = math.exp %63 : vector<32x32xf32>
    %cst_27 = arith.constant dense<0.000000e+00> : vector<32xf32>
    %65 = vector.multi_reduction <add>, %64, %cst_27 [1] : vector<32x32xf32> to vector<32xf32>
    %66 = vector.shape_cast %65 : vector<32xf32> to vector<32x1xf32>
    %67 = tpu.reciprocal %66 {approx = true} : vector<32x1xf32> -> vector<32x1xf32>
    %68 = vector.broadcast %67 : vector<32x1xf32> to vector<32x32xf32>
    %69 = arith.mulf %64, %68 : vector<32x32xf32>
    %70 = vector.shape_cast %61 : vector<32x1xi1> to vector<32x1xi1>
    %71 = vector.broadcast %70 : vector<32x1xi1> to vector<32x32xi1>
    %72 = arith.select %71, %69, %17 : vector<32x32xi1>, vector<32x32xf32>
    %73 = arith.truncf %72 : vector<32x32xf32> to vector<32x32xbf16>
    %cst_28 = arith.constant dense<0.000000e+00> : vector<32x8xf32>
    %74 = tpu.matmul %73, %55, %cst_28 {dimension_numbers = #tpu.dot_dimension_numbers<[1], [0], [0], [1], [0, 0, 1, 1], [], []>} : vector<32x32xbf16>, vector<32x8xbf16>, vector<32x8xf32> -> vector<32x8xf32>
    %c0_29 = arith.constant 0 : index
    %c0_30 = arith.constant 0 : index
    %c8 = arith.constant 8 : index
    %75 = vector.load %arg6[%c0_29, %c0_30, %c8] : memref<1x32x32xf32, #tpu.memory_space<vmem>>, vector<1x32x8xf32>
    %76 = vector.shape_cast %75 : vector<1x32x8xf32> to vector<32x8xf32>
    %77 = vector.shape_cast %74 : vector<32x8xf32> to vector<1x32x8xf32>
    tpu.vector_store %arg6[%c0_29, %c0_30, %c8], %77 {strides = array<i32>} : memref<1x32x32xf32, #tpu.memory_space<vmem>>, vector<1x32x8xf32>,
    %78 = vector.extract_strided_slice %6 {offsets = [0, 16], sizes = [32, 8], strides = [1, 1]} : vector<32x96xf32> to vector<32x8xf32>
    %cst_31 = arith.constant 0.353553385 : f32
    %79 = vector.broadcast %cst_31 : f32 to vector<32x8xf32>
    %80 = arith.mulf %78, %79 : vector<32x8xf32>
    %81 = arith.truncf %80 : vector<32x8xf32> to vector<32x8xbf16>
    %82 = vector.extract_strided_slice %6 {offsets = [0, 48], sizes = [32, 8], strides = [1, 1]} : vector<32x96xf32> to vector<32x8xf32>
    %83 = arith.truncf %82 : vector<32x8xf32> to vector<32x8xbf16>
    %84 = vector.extract_strided_slice %6 {offsets = [0, 80], sizes = [32, 8], strides = [1, 1]} : vector<32x96xf32> to vector<32x8xf32>
    %85 = arith.truncf %84 : vector<32x8xf32> to vector<32x8xbf16>
    %cst_32 = arith.constant dense<0.000000e+00> : vector<32x32xf32>
    %86 = tpu.matmul %81, %83, %cst_32 {dimension_numbers = #tpu.dot_dimension_numbers<[1], [1], [0], [0], [0, 0, 1, 0], [], []>} : vector<32x8xbf16>, vector<32x8xbf16>, vector<32x32xf32> -> vector<32x32xf32>
    %87 = arith.addf %86, %15 : vector<32x32xf32>
    %cst_33 = arith.constant dense<0xFF800000> : vector<32xf32>
    %88 = vector.multi_reduction <maximumf>, %87, %cst_33 [1] : vector<32x32xf32> to vector<32xf32>
    %89 = vector.shape_cast %88 : vector<32xf32> to vector<32x1xf32>
    %cst_34 = arith.constant -1.70141173E+38 : f32
    %90 = vector.broadcast %cst_34 : f32 to vector<32x1xf32>
    %91 = arith.cmpf ogt, %89, %90 : vector<32x1xf32>
    %92 = vector.broadcast %89 : vector<32x1xf32> to vector<32x32xf32>
    %93 = arith.subf %87, %92 : vector<32x32xf32>
    %94 = math.exp %93 : vector<32x32xf32>
    %cst_35 = arith.constant dense<0.000000e+00> : vector<32xf32>
    %95 = vector.multi_reduction <add>, %94, %cst_35 [1] : vector<32x32xf32> to vector<32xf32>
    %96 = vector.shape_cast %95 : vector<32xf32> to vector<32x1xf32>
    %97 = tpu.reciprocal %96 {approx = true} : vector<32x1xf32> -> vector<32x1xf32>
    %98 = vector.broadcast %97 : vector<32x1xf32> to vector<32x32xf32>
    %99 = arith.mulf %94, %98 : vector<32x32xf32>
    %100 = vector.shape_cast %91 : vector<32x1xi1> to vector<32x1xi1>
    %101 = vector.broadcast %100 : vector<32x1xi1> to vector<32x32xi1>
    %102 = arith.select %101, %99, %17 : vector<32x32xi1>, vector<32x32xf32>
    %103 = arith.truncf %102 : vector<32x32xf32> to vector<32x32xbf16>
    %cst_36 = arith.constant dense<0.000000e+00> : vector<32x8xf32>
    %104 = tpu.matmul %103, %85, %cst_36 {dimension_numbers = #tpu.dot_dimension_numbers<[1], [0], [0], [1], [0, 0, 1, 1], [], []>} : vector<32x32xbf16>, vector<32x8xbf16>, vector<32x8xf32> -> vector<32x8xf32>
    %c0_37 = arith.constant 0 : index
    %c0_38 = arith.constant 0 : index
    %c16 = arith.constant 16 : index
    %105 = vector.load %arg6[%c0_37, %c0_38, %c16] : memref<1x32x32xf32, #tpu.memory_space<vmem>>, vector<1x32x8xf32>
    %106 = vector.shape_cast %105 : vector<1x32x8xf32> to vector<32x8xf32>
    %107 = vector.shape_cast %104 : vector<32x8xf32> to vector<1x32x8xf32>
    tpu.vector_store %arg6[%c0_37, %c0_38, %c16], %107 {strides = array<i32>} : memref<1x32x32xf32, #tpu.memory_space<vmem>>, vector<1x32x8xf32>,
    %108 = vector.extract_strided_slice %6 {offsets = [0, 24], sizes = [32, 8], strides = [1, 1]} : vector<32x96xf32> to vector<32x8xf32>
    %cst_39 = arith.constant 0.353553385 : f32
    %109 = vector.broadcast %cst_39 : f32 to vector<32x8xf32>
    %110 = arith.mulf %108, %109 : vector<32x8xf32>
    %111 = arith.truncf %110 : vector<32x8xf32> to vector<32x8xbf16>
    %112 = vector.extract_strided_slice %6 {offsets = [0, 56], sizes = [32, 8], strides = [1, 1]} : vector<32x96xf32> to vector<32x8xf32>
    %113 = arith.truncf %112 : vector<32x8xf32> to vector<32x8xbf16>
    %114 = vector.extract_strided_slice %6 {offsets = [0, 88], sizes = [32, 8], strides = [1, 1]} : vector<32x96xf32> to vector<32x8xf32>
    %115 = arith.truncf %114 : vector<32x8xf32> to vector<32x8xbf16>
    %cst_40 = arith.constant dense<0.000000e+00> : vector<32x32xf32>
    %116 = tpu.matmul %111, %113, %cst_40 {dimension_numbers = #tpu.dot_dimension_numbers<[1], [1], [0], [0], [0, 0, 1, 0], [], []>} : vector<32x8xbf16>, vector<32x8xbf16>, vector<32x32xf32> -> vector<32x32xf32>
    %117 = arith.addf %116, %15 : vector<32x32xf32>
    %cst_41 = arith.constant dense<0xFF800000> : vector<32xf32>
    %118 = vector.multi_reduction <maximumf>, %117, %cst_41 [1] : vector<32x32xf32> to vector<32xf32>
    %119 = vector.shape_cast %118 : vector<32xf32> to vector<32x1xf32>
    %cst_42 = arith.constant -1.70141173E+38 : f32
    %120 = vector.broadcast %cst_42 : f32 to vector<32x1xf32>
    %121 = arith.cmpf ogt, %119, %120 : vector<32x1xf32>
    %122 = vector.broadcast %119 : vector<32x1xf32> to vector<32x32xf32>
    %123 = arith.subf %117, %122 : vector<32x32xf32>
    %124 = math.exp %123 : vector<32x32xf32>
    %cst_43 = arith.constant dense<0.000000e+00> : vector<32xf32>
    %125 = vector.multi_reduction <add>, %124, %cst_43 [1] : vector<32x32xf32> to vector<32xf32>
    %126 = vector.shape_cast %125 : vector<32xf32> to vector<32x1xf32>
    %127 = tpu.reciprocal %126 {approx = true} : vector<32x1xf32> -> vector<32x1xf32>
    %128 = vector.broadcast %127 : vector<32x1xf32> to vector<32x32xf32>
    %129 = arith.mulf %124, %128 : vector<32x32xf32>
    %130 = vector.shape_cast %121 : vector<32x1xi1> to vector<32x1xi1>
    %131 = vector.broadcast %130 : vector<32x1xi1> to vector<32x32xi1>
    %132 = arith.select %131, %129, %17 : vector<32x32xi1>, vector<32x32xf32>
    %133 = arith.truncf %132 : vector<32x32xf32> to vector<32x32xbf16>
    %cst_44 = arith.constant dense<0.000000e+00> : vector<32x8xf32>
    %134 = tpu.matmul %133, %115, %cst_44 {dimension_numbers = #tpu.dot_dimension_numbers<[1], [0], [0], [1], [0, 0, 1, 1], [], []>} : vector<32x32xbf16>, vector<32x8xbf16>, vector<32x8xf32> -> vector<32x8xf32>
    %c0_45 = arith.constant 0 : index
    %c0_46 = arith.constant 0 : index
    %c24 = arith.constant 24 : index
    %135 = vector.load %arg6[%c0_45, %c0_46, %c24] : memref<1x32x32xf32, #tpu.memory_space<vmem>>, vector<1x32x8xf32>
    %136 = vector.shape_cast %135 : vector<1x32x8xf32> to vector<32x8xf32>
    %137 = vector.shape_cast %134 : vector<32x8xf32> to vector<1x32x8xf32>
    tpu.vector_store %arg6[%c0_45, %c0_46, %c24], %137 {strides = array<i32>} : memref<1x32x32xf32, #tpu.memory_space<vmem>>, vector<1x32x8xf32>,
    return
  }
  func.func @transform_0(%arg0: i32) -> (i32, i32, i32) {
    %c0_i32 = arith.constant 0 : i32
    %c0_i32_0 = arith.constant 0 : i32
    %c0_i32_1 = arith.constant 0 : i32
    return %arg0, %c0_i32, %c0_i32_0 : i32, i32, i32
  }
  func.func @transform_1(%arg0: i32) -> (i32, i32) {
    %c0_i32 = arith.constant 0 : i32
    %c0_i32_0 = arith.constant 0 : i32
    %c0_i32_1 = arith.constant 0 : i32
    return %c0_i32, %c0_i32_0 : i32, i32
  }
  func.func @transform_2(%arg0: i32) -> (i32, i32) {
    %c0_i32 = arith.constant 0 : i32
    %c0_i32_0 = arith.constant 0 : i32
    %c0_i32_1 = arith.constant 0 : i32
    return %c0_i32, %c0_i32_0 : i32, i32
  }
  func.func @transform_3(%arg0: i32) -> (i32, i32) {
    %c0_i32 = arith.constant 0 : i32
    %c0_i32_0 = arith.constant 0 : i32
    %c0_i32_1 = arith.constant 0 : i32
    return %c0_i32, %c0_i32_0 : i32, i32
  }
  func.func @transform_4(%arg0: i32) -> (i32, i32, i32) {
    %c0_i32 = arith.constant 0 : i32
    %c0_i32_0 = arith.constant 0 : i32
    %c0_i32_1 = arith.constant 0 : i32
    return %arg0, %c0_i32, %c0_i32_0 : i32, i32, i32
  }
  func.func @transform_5(%arg0: i32) -> (i32, i32, i32) {
    %c0_i32 = arith.constant 0 : i32
    %c0_i32_0 = arith.constant 0 : i32
    %c0_i32_1 = arith.constant 0 : i32
    return %arg0, %c0_i32, %c0_i32_0 : i32, i32, i32
  }
}

</mosaic_0001>

<bundles_post_ra>
// kernel: tpu_custom_call.1
= control target key start
LH: loop header
LB: loop body
LE: loop exit
PB: predicated region body
PF: predicated region fallthrough
CT: control target
= control target key end

     0   :  { %10 = vsyncpa [#allocation3], 0  ;;  %s1689_s0 = inlined_call_operand.hbm [shape: bf16[1,32,32], index: 0, kind: input, shape index: {}]   ;;  %s1690_s1 = inlined_call_operand.hbm [shape: bf16[32,96], index: 1, kind: input, shape index: {}]   ;;  %s1691_s2 = inlined_call_operand.vmem [shape: f32[1,96], index: 2, kind: input, shape index: {}]   ;;  %s1692_s3 = inlined_call_operand.hbm [shape: f32[32,32], index: 3, kind: input, shape index: {}]   ;;  %s1693_s4 = inlined_call_operand.vmem [shape: f32[1,1,32], index: 4, kind: input, shape index: {}]   ;;  %s1694_s5 = inlined_call_operand.hbm [shape: f32[1,32,32], index: 5, kind: output, shape index: {}]  }
   0x1   :  { %11 = vsyncpa [#allocation6], 0 }
   0x2   :  { %12 = vsyncpa [#allocation4], 0  ;;  %s1363_s18 = smov [#allocation5]   ;;  %s1364_s20 = smov [#allocation2]  }
   0x3   :  { %s30_s19 = sshll.u32 %s1363_s18, 4  ;;  %s18_s21 = sshll.u32 %s1364_s20, 4  ;;  %s31_s19 = int_to_ptr.vmem [resolvable:$true] %s30_s19  ;;  %s19_s21 = int_to_ptr.vmem [resolvable:$true] %s18_s21 }
   0x4   :  { %s1285_s22 = scalar_lea.vmem %s31_s19, 256  ;;  %p1290_p1 = scmp.lt.s32.totalorder %s31_s19, %s31_s19 }
   0x5   :  { %p1286_p0 = scmp.ne.s32.totalorder %s31_s19, %s1285_s22  ;;  %p1291_p2 = scmp.lt.s32.totalorder %s1285_s22, %s1285_s22 }
   0x7   :  { %p1292_p3 = por %p1291_p2, %p1290_p1 }
   0x9   :  { %p1293_p4 = pnand %p1292_p3, %p1286_p0 }
   0xb   :  { %1296 = shalt.err (!%p1293_p4)
}
   0xc   :  { %s1365_s23 = smov 64   ;;  %s1366_s24 = smov 4  }
   0xd   :  { %36 = dma.hbm_to_vmem [thread:$0]  %s1690_s1, 256, %s31_s19, [#allocation6], %s1365_s23, %s1365_s23, %s1366_s24  }
   0xe   :  { %s1305_s27 = scalar_lea.vmem %s19_s21, 256  ;;  %p1310_p6 = scmp.lt.s32.totalorder %s19_s21, %s19_s21 }
   0xf   :  { %p1306_p5 = scmp.ne.s32.totalorder %s19_s21, %s1305_s27  ;;  %p1311_p7 = scmp.lt.s32.totalorder %s1305_s27, %s1305_s27 }
  0x11   :  { %p1312_p8 = por %p1311_p7, %p1310_p6 }
  0x13   :  { %p1313_p9 = pnand %p1312_p8, %p1306_p5 }
  0x15   :  { %1316 = shalt.err (!%p1313_p9)
}
  0x16   :  { %24 = dma.hbm_to_vmem [thread:$0]  %s1689_s0, 256, %s19_s21, [#allocation3], %s1365_s23, %s1365_s23, %s1366_s24  }
  0x17   :  { %s1367_s30 = smov [#allocation7]  }
  0x18   :  { %s44_s6 = sshll.u32 %s1367_s30, 4  ;;  %s45_s6 = int_to_ptr.vmem [resolvable:$true] %s44_s6 }
  0x19   :  { %s1325_s7 = scalar_lea.vmem %s45_s6, 512  ;;  %p1330_p11 = scmp.lt.s32.totalorder %s45_s6, %s45_s6 }
  0x1a   :  { %p1326_p10 = scmp.ne.s32.totalorder %s45_s6, %s1325_s7  ;;  %p1331_p12 = scmp.lt.s32.totalorder %s1325_s7, %s1325_s7 }
  0x1c   :  { %p1332_p13 = por %p1331_p12, %p1330_p11 }
  0x1e   :  { %p1333_p0 = pnand %p1332_p13, %p1326_p10 }
  0x20   :  { %1336 = shalt.err (!%p1333_p0)
}
  0x21   :  { %s1368_s1 = smov 128   ;;  %s1369_s8 = smov 8  }
  0x22   :  { %50 = dma.hbm_to_vmem [thread:$0]  %s1692_s3, 512, %s45_s6, [#allocation6], %s1368_s1, %s1368_s1, %s1369_s8  }
  0x23   :  { %1357 = dma.done.wait [#allocation3], 256  }
  0x24   :  { %1358 = vsyncadd [#allocation3], 4294967040 }
  0x25   :  { %1359 = dma.done.wait [#allocation6], 768  }
  0x26   :  { %1360 = vsyncadd [#allocation6], 4294966528  ;;  %v1209_v0 = vld [vmem:[#allocation5 + $0x8] sm:$0xff]   ;;  %v1210_v1 = vld [vmem:[#allocation5] sm:$0xff]   ;;  %vm100_vm0 = vcmask 261120   ;;  %s1370_s11 = smov 96  }
  0x27   :  { %1109 = vmatprep.subr.bf16.mxu0 %v1209_v0  ;;  %v1211_v2 = vld [vmem:[#allocation2] sm:$0xff]   ;;  %v1212_v3 = vld [vmem:[#allocation2 + $0x8] sm:$0xff]   ;;  %vm197_vm1 = vcmask 64512   ;;  %v1452_v25 = vld [vmem:[#allocation7 + $0x10] sm:$0xff]  ;;  %s1372_s13 = smov 120   ;;  %s1373_s14 = smov 56  }
  0x28   :  { %1110 = vmatpush3.bf16.msra.mxu0 %v1209_v0  ;;  %1113 = vmatprep.mubr.msk.bf16.mxu0 %vm100_vm0, %v1211_v2  ;;  %v1045_v5 = vld [vmem:[%s1691_s2] ss:$0 sm:$0xff]  ;;  %v1461_v30 = vld [vmem:[#allocation7 + $0x8] sm:$0xff]  ;;  %v1463_v32 = vld [vmem:[#allocation7 + $0x18] sm:$0xff]  ;;  %s1374_s15 = smov 80   ;;  %s1375_s16 = smov 112  }
  0x29   :  { %1111 = vmatprep.subr.bf16.mxu0 %v1210_v1  ;;  %v1052_v26 = vld [vmem:[%s1693_s4] ss:$0 sm:$0xff]  ;;  %s1371_s4 = smov 88   ;;  %s1376_s17 = smov 48   ;;  %vm596_vm14 = vcmask 130112   ;;  %vm809_vm15 = vcmask 195712  }
  0x2a   :  { %v1457_v27 = vld [vmem:[#allocation7] sm:$0xff]  ;;  %v169_v28 = vmul.f32 %v1052_v26, %v1452_v25  ;;  %v168_v34 = vmul.f32 %v1052_v26, %v1461_v30  ;;  %v170_v36 = vmul.f32 %v1052_v26, %v1463_v32  ;;  %s1377_s18 = smov 72   ;;  %s1378_s19 = smov 104  }
  0x2b   :  { %v167_v29 = vmul.f32 %v1052_v26, %v1457_v27  ;;  %s1379_s20 = smov 40   ;;  %s1380_s21 = smov 16  }
  0x2c   :  { %1112 = vmatpush3.bf16.msra.mxu0 %v1210_v1  ;;  %v1055_v31 = vadd.f32 -1.0, %v169_v28  ;;  %v1054_v38 = vadd.f32 -1.0, %v168_v34  ;;  %v1056_v41 = vadd.f32 -1.0, %v170_v36  ;;  %s1381_s22 = smov 24  }
  0x2d   :  { %v1053_v33 = vadd.f32 -1.0, %v167_v29 }
  0x2e   :  { %v1466_v35 = vmul.f32 3.4028235e+38, %v1055_v31  ;;  %v1474_v45 = vmul.f32 3.4028235e+38, %v1054_v38  ;;  %v1476_v47 = vmul.f32 3.4028235e+38, %v1056_v41 }
  0x2f   :  { %1114 = vmatmul.mubr.msk.bf16.vlgmr.msra.gmra.mxu0 %vm100_vm0, %v1212_v3  ;;  %v1469_v37 = vmul.f32 3.4028235e+38, %v1053_v33  ;;  %v1512_v31 = vmul.f32 0.2, %v1457_v27  ;;  %v1516_v33 = vmul.f32 0.2, %v1461_v30 }
  0xef   :  { %v1115_v4 = vpop.f32.mrf.mxu0 }
  0xf0   :  { %v150_v7 = vadd.f32 %v1115_v4, %v1045_v5 }
  0xf1   :  { %v141_v6 = vpop.f32.mrf.mxu0 }
  0xf2   :  { %v142_v9 = vadd.f32 %v1045_v5, %v141_v6  ;;  %v185_v12 = vmul.f32 0.35355338, %v150_v7 }
  0xf3   :  { %v1116_v8 = vpop.f32.mrf.mxu0 }
  0xf4   :  { %v153_v10 = vadd.f32 %v1116_v8, %v1045_v5  ;;  %v183_v16 = vmul.f32 0.35355338, %v142_v9 }
  0xf5   :  { %v144_v11 = vpop.f32.mrf.mxu0 }
  0xf6   :  { %v186_v13 = vmul.f32 0.35355338, %v153_v10  ;;  %v1434_v14 = vpack.c.bf16 %v153_v10, %v150_v7  ;;  %v145_v15 = vadd.f32 %v1045_v5, %v144_v11 }
  0xf8   :  { %v1436_v17 = vpack.c.bf16 %v186_v13, %v185_v12  ;;  %v184_v18 = vmul.f32 0.35355338, %v145_v15  ;;  %195 = vrot.lane.b32.xlu0 %v1434_v14, %s1370_s11  ;;  %v1441_v20 = vpack.c.bf16 %v145_v15, %v142_v9 }
  0xfa   :  { %v1439_v19 = vpack.c.bf16 %v184_v18, %v183_v16 }
  0xfc   :  { %193 = vrot.lane.b32.xlu0 %v1441_v20, %s1370_s11  ;;  %1121 = vmatprep.mubr.msk.bf16.mxu1 %vm197_vm1, %v1439_v19 }
 0x16a   :  { %v196_v21 = vpop.permute.xlu0 %195 }
 0x16b   :  { %1181 = vmatprep.subr.msk.bf16.mxu1 %vm197_vm1, %v196_v21  ;;  %v208_v22 = vsel %vm197_vm1, %v196_v21, 0 }
 0x16c   :  { %1118 = vmatpush3.bf16.xpose.msra.mxu1 %v208_v22 }
 0x16e   :  { %v194_v23 = vpop.permute.xlu0 %193 }
 0x16f   :  { %1182 = vmatprep.subr.msk.bf16.mxu1 %vm197_vm1, %v194_v23  ;;  %v205_v24 = vsel %vm197_vm1, %v194_v23, 0  ;;  %v1506_v23 = vmul.f32 0.2, %v1452_v25 }
 0x174   :  { %1120 = vmatpush3.bf16.xpose.msra.mxu1 %v205_v24  ;;  %v1509_v24 = vmul.f32 0.2, %v1463_v32 }
 0x17b   :  { %1122 = vmatmul.mubr.msk.bf16.vlgmr.msra.gmra.mxu1 %vm197_vm1, %v1436_v17 }
 0x23b   :  { %v1123_v39 = vpop.f32.mrf.mxu1 }
 0x23c   :  { %v253_v40 = vadd.f32 %v1123_v39, %v1466_v35 }
 0x23d   :  { %v244_v42 = vpop.f32.mrf.mxu1 }
 0x23e   :  { %v245_v43 = vadd.f32 %v244_v42, %v1469_v37  ;;  %v265_v44 = vsel %vm100_vm0, %v253_v40, -inf }
 0x23f   :  { %266 = vmax.xlane.f32.xlu0 %v265_v44  ;;  %v1124_v46 = vpop.f32.mrf.mxu1 }
 0x240   :  { %v259_v48 = vsel %vm100_vm0, %v245_v43, -inf  ;;  %v256_v51 = vadd.f32 %v1124_v46, %v1476_v47 }
 0x241   :  { %v247_v49 = vpop.f32.mrf.mxu1  ;;  %260 = vmax.xlane.f32.xlu1 %v259_v48 }
 0x242   :  { %v248_v50 = vadd.f32 %v247_v49, %v1474_v45  ;;  %v268_v53 = vsel %vm100_vm0, %v256_v51, -inf }
 0x244   :  { %v262_v52 = vsel %vm100_vm0, %v248_v50, -inf }
 0x245   :  { %263 = vmax.xlane.f32.xlu1 %v262_v52 }
 0x249   :  { %269 = vmax.xlane.f32.xlu1 %v268_v53 }
 0x255   :  { %321 = vrot.lane.b32.xlu0 %v1441_v20, %s1365_s23 }
 0x25a   :  { %323 = vrot.lane.b32.xlu1 %v1434_v14, %s1365_s23  ;;  %s1382_s23 = smov [#allocation8]  }
 0x25b   :  { %s1032_s24 = sshll.u32 %s1382_s23, 4  ;;  %s1033_s24 = int_to_ptr.vmem [resolvable:$true] %s1032_s24 }
 0x25c   :  { %s1337_s25 = scalar_lea.vmem %s1033_s24, 512  ;;  %p1342_p2 = scmp.lt.s32.totalorder %s1033_s24, %s1033_s24 }
 0x25d   :  { %p1338_p1 = scmp.ne.s32.totalorder %s1033_s24, %s1337_s25  ;;  %p1343_p3 = scmp.lt.s32.totalorder %s1337_s25, %s1337_s25 }
 0x25f   :  { %p1344_p4 = por %p1343_p3, %p1342_p2 }
 0x261   :  { %p1345_p5 = pnand %p1344_p4, %p1338_p1 }
 0x2c8   :  { %v1487_v54 = vpop.xlane.xlu0 %266 }
 0x2c9   :  { %v277_v55 = vsub.f32 %v253_v40, %v1487_v54  ;;  %vm273_vm2 = vcmp.gt.f32.partialorder %v1487_v54, -1.7014117e+38 }
 0x2ca   :  { %v1490_v56 = vpop.xlane.xlu1 %260 }
 0x2cb   :  { %v283_v57 = vmul.f32 1.442695, %v277_v55  ;;  %v275_v58 = vsub.f32 %v245_v43, %v1490_v56  ;;  %vm271_vm4 = vcmp.gt.f32.partialorder %v1490_v56, -1.7014117e+38 }
 0x2cc   :  { %v322_v3 = vpop.permute.xlu0 %321 }
 0x2cd   :  { %1213 = vpow2.f32 %v283_v57  ;;  %v279_v59 = vmul.f32 1.442695, %v275_v58 }
 0x2ce   :  { %v1493_v60 = vpop.xlane.xlu1 %263 }
 0x2cf   :  { %1215 = vpow2.f32 %v279_v59  ;;  %v276_v61 = vsub.f32 %v248_v50, %v1493_v60  ;;  %vm272_vm5 = vcmp.gt.f32.partialorder %v1493_v60, -1.7014117e+38 }
 0x2d1   :  { %v281_v0 = vmul.f32 1.442695, %v276_v61 }
 0x2d2   :  { %v270_v62 = vpop.xlane.xlu1 %269 }
 0x2d3   :  { %v278_v63 = vsub.f32 %v256_v51, %v270_v62  ;;  %vm274_vm3 = vcmp.gt.f32.partialorder %v270_v62, -1.7014117e+38 }
 0x2d5   :  { %v285_v1 = vmul.f32 1.442695, %v278_v63 }
 0x2d6   :  { %v324_v2 = vpop.permute.xlu1 %323 }
 0x2d7   :  { %1217 = vpow2.f32 %v285_v1  ;;  %1125 = vmatprep.subr.bf16.mxu0 %v324_v2 }
 0x2d8   :  { %1126 = vmatpush3.bf16.msra.mxu0 %v324_v2  ;;  %1219 = vpow2.f32 %v281_v0 }
 0x2d9   :  { %1127 = vmatprep.subr.bf16.mxu0 %v322_v3 }
 0x2da   :  { %v1214_v4 = vpop.eup %1213 }
 0x2db   :  { %v293_v5 = vsel %vm100_vm0, %v1214_v4, 0.0 }
 0x2dc   :  { %v1216_v6 = vpop.eup %1215  ;;  %294 = vadd.xlane.f32.xlu1 %v293_v5  ;;  %1128 = vmatpush3.bf16.msra.mxu0 %v322_v3 }
 0x2dd   :  { %v287_v7 = vsel %vm100_vm0, %v1216_v6, 0.0 }
 0x2e0   :  { %288 = vadd.xlane.f32.xlu1 %v287_v7 }
 0x2e4   :  { %v1218_v8 = vpop.eup %1217 }
 0x2e5   :  { %v296_v9 = vsel %vm100_vm0, %v1218_v8, 0.0  ;;  %v1220_v10 = vpop.eup %1219 }
 0x2e6   :  { %297 = vadd.xlane.f32.xlu1 %v296_v9  ;;  %v290_v11 = vsel %vm100_vm0, %v1220_v10, 0.0 }
 0x2ea   :  { %291 = vadd.xlane.f32.xlu1 %v290_v11 }
 0x2fb   :  { %394 = vrot.lane.b32.xlu1 %v1434_v14, %s1371_s4 }
 0x2ff   :  { %392 = vrot.lane.b32.xlu1 %v1441_v20, %s1371_s4 }
 0x303   :  { %388 = vrot.lane.b32.xlu1 %v1439_v19, %s1372_s13 }
 0x307   :  { %390 = vrot.lane.b32.xlu1 %v1436_v17, %s1372_s13 }
 0x365   :  { %v295_v12 = vpop.xlane.xlu1 %294 }
 0x366   :  { %1221 = vrcp.f32 %v295_v12 }
 0x369   :  { %v289_v13 = vpop.xlane.xlu1 %288 }
 0x36a   :  { %1223 = vrcp.f32 %v289_v13 }
 0x36f   :  { %v298_v15 = vpop.xlane.xlu1 %297 }
 0x370   :  { %1225 = vrcp.f32 %v298_v15 }
 0x373   :  { %v292_v16 = vpop.xlane.xlu1 %291  ;;  %v1222_v21 = vpop.eup %1221 }
 0x374   :  { %1227 = vrcp.f32 %v292_v16  ;;  %v305_v26 = vmul.f32 %v1222_v21, %v1214_v4 }
 0x376   :  { %v317_v36 = vsel %vm273_vm2, %v305_v26, %v1506_v23 }
 0x377   :  { %v395_v18 = vpop.permute.xlu1 %394  ;;  %v1224_v22 = vpop.eup %1223 }
 0x378   :  { %1183 = vmatprep.subr.msk.bf16.mxu0 %vm197_vm1, %v395_v18  ;;  %v303_v34 = vmul.f32 %v1224_v22, %v1216_v6  ;;  %v406_v30 = vsel %vm197_vm1, %v395_v18, 0 }
 0x37a   :  { %v315_v27 = vsel %vm271_vm4, %v303_v34, %v1512_v31 }
 0x37b   :  { %v393_v39 = vpop.permute.xlu1 %392 }
 0x37c   :  { %v403_v44 = vsel %vm197_vm1, %v393_v39, 0 }
 0x37d   :  { %v1226_v28 = vpop.eup %1225 }
 0x37e   :  { %v306_v29 = vmul.f32 %v1226_v28, %v1218_v8 }
 0x37f   :  { %v389_v43 = vpop.permute.xlu1 %388 }
 0x380   :  { %v318_v25 = vsel %vm274_vm3, %v306_v29, %v1509_v24 }
 0x381   :  { %v1228_v38 = vpop.eup %1227  ;;  %v320_v32 = vpack.c.bf16 %v318_v25, %v317_v36 }
 0x382   :  { %v304_v40 = vmul.f32 %v1228_v38, %v1220_v10 }
 0x383   :  { %v391_v46 = vpop.permute.xlu1 %390 }
 0x384   :  { %v316_v41 = vsel %vm272_vm5, %v304_v40, %v1516_v33  ;;  %vm1022_vm5 = vcmask 261312  }
 0x385   :  { %v319_v42 = vpack.c.bf16 %v316_v41, %v315_v27 }
 0x387   :  { %1129 = vmatprep.mubr.msk.bf16.mxu0 %vm100_vm0, %v319_v42 }
 0x388   :  { %1130 = vmatmul.mubr.msk.bf16.vlgmr.msra.gmra.mxu0 %vm100_vm0, %v320_v32 }
 0x389   :  { %1134 = vmatpush3.bf16.xpose.msra.mxu0 %v406_v30  ;;  %1137 = vmatprep.mubr.msk.bf16.mxu0 %vm197_vm1, %v389_v43 }
 0x38a   :  { %1184 = vmatprep.subr.msk.bf16.mxu0 %vm197_vm1, %v393_v39 }
 0x391   :  { %1136 = vmatpush3.bf16.xpose.msra.mxu0 %v403_v44 }
 0x398   :  { %1138 = vmatmul.mubr.msk.bf16.vlgmr.msra.gmra.mxu0 %vm197_vm1, %v391_v46 }
 0x448   :  { %v1131_v48 = vpop.f32.mrf.mxu0 }
 0x449   :  { %384 = vst.msk [vmem:[#allocation8 + $0x10] sm:$0xff] %vm197_vm1, %v1131_v48 }
 0x44a   :  { %v367_v49 = vpop.f32.mrf.mxu0 }
 0x44b   :  { %382 = vst.msk [vmem:[#allocation8] sm:$0xff] %vm197_vm1, %v367_v49 }
 0x44c   :  { %v1132_v50 = vpop.f32.mrf.mxu0 }
 0x44d   :  { %385 = vst.msk [vmem:[#allocation8 + $0x18] sm:$0xff] %vm197_vm1, %v1132_v50 }
 0x44e   :  { %v370_v51 = vpop.f32.mrf.mxu0 }
 0x44f   :  { %383 = vst.msk [vmem:[#allocation8 + $0x8] sm:$0xff] %vm197_vm1, %v370_v51 }
 0x458   :  { %v1139_v52 = vpop.f32.mrf.mxu0 }
 0x459   :  { %v451_v56 = vadd.f32 %v1139_v52, %v1466_v35 }
 0x45a   :  { %v442_v53 = vpop.f32.mrf.mxu0 }
 0x45b   :  { %v443_v54 = vadd.f32 %v442_v53, %v1469_v37  ;;  %v463_v62 = vsel %vm100_vm0, %v451_v56, -inf }
 0x45c   :  { %v1140_v55 = vpop.f32.mrf.mxu0 }
 0x45d   :  { %v457_v57 = vsel %vm100_vm0, %v443_v54, -inf  ;;  %v454_v60 = vadd.f32 %v1140_v55, %v1476_v47 }
 0x45e   :  { %v445_v58 = vpop.f32.mrf.mxu0  ;;  %458 = vmax.xlane.f32.xlu0 %v457_v57 }
 0x45f   :  { %v446_v59 = vadd.f32 %v445_v58, %v1474_v45  ;;  %v466_v63 = vsel %vm100_vm0, %v454_v60, -inf }
 0x461   :  { %v460_v61 = vsel %vm100_vm0, %v446_v59, -inf }
 0x462   :  { %461 = vmax.xlane.f32.xlu1 %v460_v61  ;;  %464 = vmax.xlane.f32.xlu0 %v463_v62 }
 0x466   :  { %467 = vmax.xlane.f32.xlu0 %v466_v63 }
 0x473   :  { %521 = vrot.lane.b32.xlu1 %v1434_v14, %s1373_s14 }
 0x4e7   :  { %v1545_v0 = vpop.xlane.xlu0 %458 }
 0x4e8   :  { %v473_v1 = vsub.f32 %v443_v54, %v1545_v0  ;;  %vm469_vm7 = vcmp.gt.f32.partialorder %v1545_v0, -1.7014117e+38 }
 0x4ea   :  { %v477_v6 = vmul.f32 1.442695, %v473_v1 }
 0x4eb   :  { %v1548_v2 = vpop.xlane.xlu1 %461  ;;  %v1550_v3 = vpop.xlane.xlu0 %464 }
 0x4ec   :  { %v475_v4 = vsub.f32 %v451_v56, %v1550_v3  ;;  %v474_v5 = vsub.f32 %v446_v59, %v1548_v2  ;;  %vm470_vm8 = vcmp.gt.f32.partialorder %v1548_v2, -1.7014117e+38  ;;  %vm471_vm9 = vcmp.gt.f32.partialorder %v1550_v3, -1.7014117e+38 }
 0x4ee   :  { %v481_v7 = vmul.f32 1.442695, %v475_v4  ;;  %v479_v11 = vmul.f32 1.442695, %v474_v5 }
 0x4ef   :  { %v522_v8 = vpop.permute.xlu1 %521  ;;  %v468_v9 = vpop.xlane.xlu0 %467 }
 0x4f0   :  { %v476_v10 = vsub.f32 %v454_v60, %v468_v9  ;;  %1141 = vmatprep.subr.bf16.mxu1 %v522_v8  ;;  %1229 = vpow2.f32 %v481_v7  ;;  %vm472_vm6 = vcmp.gt.f32.partialorder %v468_v9, -1.7014117e+38 }
 0x4f1   :  { %1142 = vmatpush3.bf16.msra.mxu1 %v522_v8  ;;  %1231 = vpow2.f32 %v477_v6 }
 0x4f2   :  { %v483_v12 = vmul.f32 1.442695, %v476_v10 }
 0x4f4   :  { %1233 = vpow2.f32 %v483_v12 }
 0x4f5   :  { %1235 = vpow2.f32 %v479_v11 }
 0x4fd   :  { %v1230_v13 = vpop.eup %1229 }
 0x4fe   :  { %v491_v15 = vsel %vm100_vm0, %v1230_v13, 0.0  ;;  %v1232_v16 = vpop.eup %1231 }
 0x4ff   :  { %492 = vadd.xlane.f32.xlu1 %v491_v15  ;;  %v485_v26 = vsel %vm100_vm0, %v1232_v16, 0.0 }
 0x501   :  { %v1234_v18 = vpop.eup %1233 }
 0x502   :  { %v494_v21 = vsel %vm100_vm0, %v1234_v18, 0.0  ;;  %v1236_v22 = vpop.eup %1235 }
 0x503   :  { %495 = vadd.xlane.f32.xlu0 %v494_v21  ;;  %486 = vadd.xlane.f32.xlu1 %v485_v26  ;;  %v488_v28 = vsel %vm100_vm0, %v1236_v22, 0.0 }
 0x507   :  { %489 = vadd.xlane.f32.xlu0 %v488_v28 }
 0x514   :  { %607 = vrot.lane.b32.xlu1 %v1434_v14, %s1374_s15 }
 0x518   :  { %605 = vrot.lane.b32.xlu1 %v1441_v20, %s1374_s15 }
 0x51c   :  { %603 = vrot.lane.b32.xlu1 %v1436_v17, %s1375_s16 }
 0x51d   :  { %519 = vrot.lane.b32.xlu0 %v1441_v20, %s1373_s14 }
 0x521   :  { %601 = vrot.lane.b32.xlu0 %v1439_v19, %s1375_s16 }
 0x588   :  { %v493_v29 = vpop.xlane.xlu1 %492 }
 0x589   :  { %1237 = vrcp.f32 %v493_v29 }
 0x58c   :  { %v496_v34 = vpop.xlane.xlu0 %495  ;;  %v487_v36 = vpop.xlane.xlu1 %486 }
 0x58d   :  { %1239 = vrcp.f32 %v496_v34 }
 0x58e   :  { %1241 = vrcp.f32 %v487_v36 }
 0x590   :  { %v490_v25 = vpop.xlane.xlu0 %489  ;;  %v608_v32 = vpop.permute.xlu1 %607 }
 0x591   :  { %1243 = vrcp.f32 %v490_v25  ;;  %v619_v53 = vsel %vm197_vm1, %v608_v32, 0 }
 0x594   :  { %v520_v38 = vpop.permute.xlu0 %519  ;;  %v606_v55 = vpop.permute.xlu1 %605 }
 0x595   :  { %1143 = vmatprep.subr.bf16.mxu1 %v520_v38  ;;  %v616_v56 = vsel %vm197_vm1, %v606_v55, 0 }
 0x596   :  { %1144 = vmatpush3.bf16.msra.mxu1 %v520_v38  ;;  %v1238_v39 = vpop.eup %1237 }
 0x597   :  { %1185 = vmatprep.subr.msk.bf16.mxu1 %vm197_vm1, %v608_v32  ;;  %v503_v43 = vmul.f32 %v1238_v39, %v1230_v13 }
 0x598   :  { %v602_v54 = vpop.permute.xlu0 %601  ;;  %v604_v57 = vpop.permute.xlu1 %603 }
 0x599   :  { %v515_v51 = vsel %vm471_vm9, %v503_v43, %v1506_v23 }
 0x59a   :  { %v1240_v40 = vpop.eup %1239 }
 0x59b   :  { %v1242_v27 = vpop.eup %1241  ;;  %v504_v41 = vmul.f32 %v1240_v40, %v1234_v18 }
 0x59c   :  { %v501_v42 = vmul.f32 %v1242_v27, %v1232_v16 }
 0x59d   :  { %v516_v46 = vsel %vm472_vm6, %v504_v41, %v1509_v24 }
 0x59e   :  { %v1244_v30 = vpop.eup %1243  ;;  %v513_v48 = vsel %vm469_vm7, %v501_v42, %v1512_v31  ;;  %v518_v52 = vpack.c.bf16 %v516_v46, %v515_v51 }
 0x59f   :  { %v502_v44 = vmul.f32 %v1244_v30, %v1236_v22 }
 0x5a1   :  { %v514_v49 = vsel %vm470_vm8, %v502_v44, %v1516_v33 }
 0x5a2   :  { %v517_v50 = vpack.c.bf16 %v514_v49, %v513_v48 }
 0x5a4   :  { %1145 = vmatprep.mubr.msk.bf16.mxu1 %vm100_vm0, %v517_v50 }
 0x5a5   :  { %1146 = vmatmul.mubr.msk.bf16.vlgmr.msra.gmra.mxu1 %vm100_vm0, %v518_v52 }
 0x5a6   :  { %1150 = vmatpush3.bf16.xpose.msra.mxu1 %v619_v53  ;;  %1153 = vmatprep.mubr.msk.bf16.mxu1 %vm197_vm1, %v602_v54 }
 0x5a7   :  { %1186 = vmatprep.subr.msk.bf16.mxu1 %vm197_vm1, %v606_v55 }
 0x5ae   :  { %1152 = vmatpush3.bf16.xpose.msra.mxu1 %v616_v56 }
 0x5b5   :  { %1154 = vmatmul.mubr.msk.bf16.vlgmr.msra.gmra.mxu1 %vm197_vm1, %v604_v57 }
 0x665   :  { %v1579_v58 = vpop.f32.mrf.mxu1 }
 0x667   :  { %v1581_v59 = vpop.f32.mrf.mxu1 }
 0x669   :  { %v1583_v60 = vpop.f32.mrf.mxu1 }
 0x66b   :  { %v1585_v61 = vpop.f32.mrf.mxu1 }
 0x675   :  { %v1155_v62 = vpop.f32.mrf.mxu1 }
 0x676   :  { %v664_v2 = vadd.f32 %v1155_v62, %v1466_v35 }
 0x677   :  { %v655_v63 = vpop.f32.mrf.mxu1 }
 0x678   :  { %v656_v0 = vadd.f32 %v655_v63, %v1469_v37  ;;  %v676_v8 = vsel %vm100_vm0, %v664_v2, -inf }
 0x679   :  { %v1156_v1 = vpop.f32.mrf.mxu1 }
 0x67a   :  { %v670_v3 = vsel %vm100_vm0, %v656_v0, -inf  ;;  %v667_v6 = vadd.f32 %v1156_v1, %v1476_v47 }
 0x67b   :  { %v658_v4 = vpop.f32.mrf.mxu1  ;;  %671 = vmax.xlane.f32.xlu0 %v670_v3 }
 0x67c   :  { %v659_v5 = vadd.f32 %v658_v4, %v1474_v45  ;;  %v679_v9 = vsel %vm100_vm0, %v667_v6, -inf }
 0x67e   :  { %v673_v7 = vsel %vm100_vm0, %v659_v5, -inf }
 0x67f   :  { %674 = vmax.xlane.f32.xlu1 %v673_v7  ;;  %677 = vmax.xlane.f32.xlu0 %v676_v8 }
 0x683   :  { %680 = vmax.xlane.f32.xlu0 %v679_v9 }
 0x690   :  { %734 = vrot.lane.b32.xlu1 %v1434_v14, %s1376_s17 }
 0x704   :  { %v1597_v10 = vpop.xlane.xlu0 %671 }
 0x705   :  { %v686_v11 = vsub.f32 %v656_v0, %v1597_v10  ;;  %vm682_vm11 = vcmp.gt.f32.partialorder %v1597_v10, -1.7014117e+38 }
 0x707   :  { %v690_v18 = vmul.f32 1.442695, %v686_v11 }
 0x708   :  { %v1600_v12 = vpop.xlane.xlu1 %674  ;;  %v1602_v13 = vpop.xlane.xlu0 %677 }
 0x709   :  { %v688_v15 = vsub.f32 %v664_v2, %v1602_v13  ;;  %v687_v16 = vsub.f32 %v659_v5, %v1600_v12  ;;  %vm683_vm12 = vcmp.gt.f32.partialorder %v1600_v12, -1.7014117e+38  ;;  %vm684_vm13 = vcmp.gt.f32.partialorder %v1602_v13, -1.7014117e+38 }
 0x70b   :  { %v694_v21 = vmul.f32 1.442695, %v688_v15  ;;  %v692_v29 = vmul.f32 1.442695, %v687_v16 }
 0x70c   :  { %v735_v22 = vpop.permute.xlu1 %734  ;;  %v681_v26 = vpop.xlane.xlu0 %680 }
 0x70d   :  { %v689_v28 = vsub.f32 %v667_v6, %v681_v26  ;;  %1157 = vmatprep.subr.bf16.mxu0 %v735_v22  ;;  %1245 = vpow2.f32 %v694_v21  ;;  %vm685_vm10 = vcmp.gt.f32.partialorder %v681_v26, -1.7014117e+38 }
 0x70e   :  { %1158 = vmatpush3.bf16.msra.mxu0 %v735_v22  ;;  %1247 = vpow2.f32 %v690_v18 }
 0x70f   :  { %v696_v34 = vmul.f32 1.442695, %v689_v28 }
 0x711   :  { %1249 = vpow2.f32 %v696_v34 }
 0x712   :  { %1251 = vpow2.f32 %v692_v29 }
 0x71a   :  { %v1246_v36 = vpop.eup %1245 }
 0x71b   :  { %v704_v25 = vsel %vm100_vm0, %v1246_v36, 0.0  ;;  %v1248_v38 = vpop.eup %1247 }
 0x71c   :  { %705 = vadd.xlane.f32.xlu1 %v704_v25  ;;  %v698_v27 = vsel %vm100_vm0, %v1248_v38, 0.0 }
 0x71e   :  { %v1250_v32 = vpop.eup %1249 }
 0x71f   :  { %v707_v39 = vsel %vm100_vm0, %v1250_v32, 0.0  ;;  %v1252_v40 = vpop.eup %1251 }
 0x720   :  { %708 = vadd.xlane.f32.xlu0 %v707_v39  ;;  %699 = vadd.xlane.f32.xlu1 %v698_v27  ;;  %v701_v41 = vsel %vm100_vm0, %v1252_v40, 0.0 }
 0x724   :  { %702 = vadd.xlane.f32.xlu0 %v701_v41 }
 0x731   :  { %820 = vrot.lane.b32.xlu1 %v1434_v14, %s1377_s18 }
 0x735   :  { %818 = vrot.lane.b32.xlu1 %v1441_v20, %s1377_s18 }
 0x739   :  { %816 = vrot.lane.b32.xlu1 %v1436_v17, %s1378_s19 }
 0x73a   :  { %732 = vrot.lane.b32.xlu0 %v1441_v20, %s1376_s17 }
 0x73e   :  { %814 = vrot.lane.b32.xlu0 %v1439_v19, %s1378_s19 }
 0x7a5   :  { %v706_v42 = vpop.xlane.xlu1 %705 }
 0x7a6   :  { %1253 = vrcp.f32 %v706_v42 }
 0x7a9   :  { %v709_v30 = vpop.xlane.xlu0 %708  ;;  %v700_v43 = vpop.xlane.xlu1 %699 }
 0x7aa   :  { %1255 = vrcp.f32 %v709_v30 }
 0x7ab   :  { %1257 = vrcp.f32 %v700_v43 }
 0x7ad   :  { %v703_v44 = vpop.xlane.xlu0 %702  ;;  %v821_v48 = vpop.permute.xlu1 %820 }
 0x7ae   :  { %1259 = vrcp.f32 %v703_v44  ;;  %v832_v1 = vsel %vm197_vm1, %v821_v48, 0 }
 0x7b1   :  { %v733_v46 = vpop.permute.xlu0 %732  ;;  %v819_v3 = vpop.permute.xlu1 %818 }
 0x7b2   :  { %1159 = vmatprep.subr.bf16.mxu0 %v733_v46  ;;  %v829_v4 = vsel %vm197_vm1, %v819_v3, 0 }
 0x7b3   :  { %1160 = vmatpush3.bf16.msra.mxu0 %v733_v46  ;;  %v1254_v17 = vpop.eup %1253 }
 0x7b4   :  { %1187 = vmatprep.subr.msk.bf16.mxu0 %vm197_vm1, %v821_v48  ;;  %v716_v53 = vmul.f32 %v1254_v17, %v1246_v36 }
 0x7b5   :  { %v815_v2 = vpop.permute.xlu0 %814  ;;  %v817_v5 = vpop.permute.xlu1 %816 }
 0x7b6   :  { %v728_v63 = vsel %vm684_vm13, %v716_v53, %v1506_v23 }
 0x7b7   :  { %v1256_v49 = vpop.eup %1255 }
 0x7b8   :  { %v1258_v50 = vpop.eup %1257  ;;  %v717_v51 = vmul.f32 %v1256_v49, %v1250_v32 }
 0x7b9   :  { %v714_v52 = vmul.f32 %v1258_v50, %v1248_v38 }
 0x7ba   :  { %v729_v55 = vsel %vm685_vm10, %v717_v51, %v1509_v24 }
 0x7bb   :  { %v1260_v19 = vpop.eup %1259  ;;  %v726_v56 = vsel %vm682_vm11, %v714_v52, %v1512_v31  ;;  %v731_v0 = vpack.c.bf16 %v729_v55, %v728_v63 }
 0x7bc   :  { %v715_v54 = vmul.f32 %v1260_v19, %v1252_v40 }
 0x7be   :  { %v727_v57 = vsel %vm683_vm12, %v715_v54, %v1516_v33 }
 0x7bf   :  { %v730_v62 = vpack.c.bf16 %v727_v57, %v726_v56 }
 0x7c1   :  { %1161 = vmatprep.mubr.msk.bf16.mxu0 %vm100_vm0, %v730_v62 }
 0x7c2   :  { %1162 = vmatmul.mubr.msk.bf16.vlgmr.msra.gmra.mxu0 %vm100_vm0, %v731_v0 }
 0x7c3   :  { %1166 = vmatpush3.bf16.xpose.msra.mxu0 %v832_v1  ;;  %1169 = vmatprep.mubr.msk.bf16.mxu0 %vm197_vm1, %v815_v2 }
 0x7c4   :  { %1188 = vmatprep.subr.msk.bf16.mxu0 %vm197_vm1, %v819_v3 }
 0x7cb   :  { %1168 = vmatpush3.bf16.xpose.msra.mxu0 %v829_v4 }
 0x7d2   :  { %1170 = vmatmul.mubr.msk.bf16.vlgmr.msra.gmra.mxu0 %vm197_vm1, %v817_v5 }
 0x882   :  { %v1163_v6 = vpop.f32.mrf.mxu0 }
 0x884   :  { %v778_v7 = vpop.f32.mrf.mxu0 }
 0x886   :  { %v1164_v8 = vpop.f32.mrf.mxu0 }
 0x888   :  { %v781_v9 = vpop.f32.mrf.mxu0 }
 0x892   :  { %v1171_v10 = vpop.f32.mrf.mxu0 }
 0x893   :  { %v877_v15 = vadd.f32 %v1171_v10, %v1466_v35 }
 0x894   :  { %v868_v11 = vpop.f32.mrf.mxu0 }
 0x895   :  { %v869_v12 = vadd.f32 %v868_v11, %v1469_v37  ;;  %v889_v28 = vsel %vm100_vm0, %v877_v15, -inf }
 0x896   :  { %v1172_v13 = vpop.f32.mrf.mxu0 }
 0x897   :  { %v883_v16 = vsel %vm100_vm0, %v869_v12, -inf  ;;  %v880_v22 = vadd.f32 %v1172_v13, %v1476_v47 }
 0x898   :  { %v871_v18 = vpop.f32.mrf.mxu0  ;;  %884 = vmax.xlane.f32.xlu0 %v883_v16 }
 0x899   :  { %v872_v21 = vadd.f32 %v871_v18, %v1474_v45  ;;  %v892_v29 = vsel %vm100_vm0, %v880_v22, -inf }
 0x89b   :  { %v886_v26 = vsel %vm100_vm0, %v872_v21, -inf }
 0x89c   :  { %887 = vmax.xlane.f32.xlu1 %v886_v26  ;;  %890 = vmax.xlane.f32.xlu0 %v889_v28 }
 0x8a0   :  { %893 = vmax.xlane.f32.xlu0 %v892_v29 }
 0x921   :  { %v1639_v37 = vpop.xlane.xlu0 %884 }
 0x922   :  { %v899_v35 = vsub.f32 %v869_v12, %v1639_v37  ;;  %vm895_vm2 = vcmp.gt.f32.partialorder %v1639_v37, -1.7014117e+38 }
 0x924   :  { %v903_v25 = vmul.f32 1.442695, %v899_v35 }
 0x925   :  { %v1642_v34 = vpop.xlane.xlu1 %887  ;;  %v1644_v36 = vpop.xlane.xlu0 %890 }
 0x926   :  { %v901_v45 = vsub.f32 %v877_v15, %v1644_v36  ;;  %v900_v47 = vsub.f32 %v872_v21, %v1642_v34  ;;  %vm896_vm3 = vcmp.gt.f32.partialorder %v1642_v34, -1.7014117e+38  ;;  %vm897_vm4 = vcmp.gt.f32.partialorder %v1644_v36, -1.7014117e+38 }
 0x928   :  { %v907_v38 = vmul.f32 1.442695, %v901_v45  ;;  %v905_v40 = vmul.f32 1.442695, %v900_v47 }
 0x929   :  { %v1648_v32 = vpop.xlane.xlu0 %893 }
 0x92a   :  { %v902_v39 = vsub.f32 %v880_v22, %v1648_v32  ;;  %1261 = vpow2.f32 %v907_v38  ;;  %vm898_vm1 = vcmp.gt.f32.partialorder %v1648_v32, -1.7014117e+38 }
 0x92b   :  { %1263 = vpow2.f32 %v903_v25 }
 0x92c   :  { %v909_v27 = vmul.f32 1.442695, %v902_v39 }
 0x92e   :  { %1265 = vpow2.f32 %v909_v27 }
 0x92f   :  { %1267 = vpow2.f32 %v905_v40 }
 0x937   :  { %v1262_v41 = vpop.eup %1261 }
 0x938   :  { %v917_v42 = vsel %vm100_vm0, %v1262_v41, 0.0  ;;  %v1264_v30 = vpop.eup %1263 }
 0x939   :  { %918 = vadd.xlane.f32.xlu1 %v917_v42  ;;  %v911_v48 = vsel %vm100_vm0, %v1264_v30, 0.0 }
 0x93b   :  { %v1266_v43 = vpop.eup %1265 }
 0x93c   :  { %v920_v44 = vsel %vm100_vm0, %v1266_v43, 0.0  ;;  %v1268_v46 = vpop.eup %1267 }
 0x93d   :  { %921 = vadd.xlane.f32.xlu0 %v920_v44  ;;  %912 = vadd.xlane.f32.xlu1 %v911_v48  ;;  %v914_v17 = vsel %vm100_vm0, %v1268_v46, 0.0 }
 0x941   :  { %915 = vadd.xlane.f32.xlu0 %v914_v17 }
 0x94e   :  { %947 = vrot.lane.b32.xlu1 %v1434_v14, %s1379_s20 }
 0x952   :  { %584 = vrot.lane.b32.xlu1 %v1581_v59, %s1369_s8 }
 0x956   :  { %586 = vrot.lane.b32.xlu1 %v1585_v61, %s1369_s8 }
 0x957   :  { %945 = vrot.lane.b32.xlu0 %v1441_v20, %s1379_s20 }
 0x95a   :  { %590 = vrot.lane.b32.xlu1 %v1583_v60, %s1369_s8 }
 0x95b   :  { %588 = vrot.lane.b32.xlu0 %v1579_v58, %s1369_s8 }
 0x95e   :  { %799 = vrot.lane.b32.xlu1 %v781_v9, %s1380_s21 }
 0x95f   :  { %797 = vrot.lane.b32.xlu0 %v778_v7, %s1380_s21 }
 0x962   :  { %803 = vrot.lane.b32.xlu1 %v1164_v8, %s1380_s21 }
 0x963   :  { %801 = vrot.lane.b32.xlu0 %v1163_v6, %s1380_s21 }
 0x9c2   :  { %v919_v14 = vpop.xlane.xlu1 %918 }
 0x9c3   :  { %1269 = vrcp.f32 %v919_v14 }
 0x9c6   :  { %v922_v49 = vpop.xlane.xlu0 %921  ;;  %v913_v59 = vpop.xlane.xlu1 %912 }
 0x9c7   :  { %1271 = vrcp.f32 %v922_v49 }
 0x9c8   :  { %1273 = vrcp.f32 %v913_v59 }
 0x9ca   :  { %v916_v61 = vpop.xlane.xlu0 %915  ;;  %v948_v50 = vpop.permute.xlu1 %947 }
 0x9cb   :  { %1275 = vrcp.f32 %v916_v61  ;;  %1173 = vmatprep.subr.bf16.mxu1 %v948_v50 }
 0x9cc   :  { %1174 = vmatpush3.bf16.msra.mxu1 %v948_v50 }
 0x9ce   :  { %v946_v20 = vpop.permute.xlu0 %945  ;;  %v585_v60 = vpop.permute.xlu1 %584 }
 0x9cf   :  { %1175 = vmatprep.subr.bf16.mxu1 %v946_v20  ;;  %597 = vst.msk [vmem:[#allocation8] sm:$0xff] %vm596_vm14, %v585_v60 }
 0x9d0   :  { %1176 = vmatpush3.bf16.msra.mxu1 %v946_v20  ;;  %v1270_v51 = vpop.eup %1269 }
 0x9d1   :  { %v929_v63 = vmul.f32 %v1270_v51, %v1262_v41 }
 0x9d2   :  { %v589_v58 = vpop.permute.xlu0 %588  ;;  %v587_v52 = vpop.permute.xlu1 %586 }
 0x9d3   :  { %599 = vst.msk [vmem:[#allocation8 + $0x10] sm:$0xff] %vm596_vm14, %v589_v58  ;;  %598 = vst.msk [vmem:[#allocation8 + $0x8] sm:$0xff] %vm596_vm14, %v587_v52  ;;  %v941_v7 = vsel %vm897_vm4, %v929_v63, %v1506_v23 }
 0x9d4   :  { %v1272_v19 = vpop.eup %1271 }
 0x9d5   :  { %v1274_v53 = vpop.eup %1273  ;;  %v930_v54 = vmul.f32 %v1272_v19, %v1266_v43 }
 0x9d6   :  { %v798_v55 = vpop.permute.xlu0 %797  ;;  %v591_v56 = vpop.permute.xlu1 %590  ;;  %v927_v57 = vmul.f32 %v1274_v53, %v1264_v30 }
 0x9d7   :  { %810 = vst.msk [vmem:[#allocation8] sm:$0xff] %vm809_vm15, %v798_v55  ;;  %v942_v2 = vsel %vm898_vm1, %v930_v54, %v1509_v24 }
 0x9d8   :  { %v1276_v62 = vpop.eup %1275  ;;  %600 = vst.msk [vmem:[#allocation8 + $0x18] sm:$0xff] %vm596_vm14, %v591_v56  ;;  %v939_v4 = vsel %vm895_vm2, %v927_v57, %v1512_v31  ;;  %v944_v8 = vpack.c.bf16 %v942_v2, %v941_v7 }
 0x9d9   :  { %v928_v0 = vmul.f32 %v1276_v62, %v1268_v46 }
 0x9da   :  { %v802_v1 = vpop.permute.xlu0 %801  ;;  %v800_v3 = vpop.permute.xlu1 %799 }
 0x9db   :  { %812 = vst.msk [vmem:[#allocation8 + $0x10] sm:$0xff] %vm809_vm15, %v802_v1  ;;  %v940_v5 = vsel %vm896_vm3, %v928_v0, %v1516_v33  ;;  %811 = vst.msk [vmem:[#allocation8 + $0x8] sm:$0xff] %vm809_vm15, %v800_v3 }
 0x9dc   :  { %v943_v6 = vpack.c.bf16 %v940_v5, %v939_v4 }
 0x9de   :  { %1177 = vmatprep.mubr.msk.bf16.mxu1 %vm100_vm0, %v943_v6  ;;  %v804_v9 = vpop.permute.xlu1 %803 }
 0x9df   :  { %1178 = vmatmul.mubr.msk.bf16.vlgmr.msra.gmra.mxu1 %vm100_vm0, %v944_v8  ;;  %813 = vst.msk [vmem:[#allocation8 + $0x18] sm:$0xff] %vm809_vm15, %v804_v9 }
 0xa9f   :  { %v1179_v24 = vpop.f32.mrf.mxu1 }
 0xaa1   :  { %v991_v10 = vpop.f32.mrf.mxu1 }
 0xaa2   :  { %1010 = vrot.lane.b32.xlu0 %v991_v10, %s1381_s22 }
 0xaa3   :  { %v1180_v31 = vpop.f32.mrf.mxu1 }
 0xaa5   :  { %v994_v11 = vpop.f32.mrf.mxu1 }
 0xaa6   :  { %1014 = vrot.lane.b32.xlu0 %v1179_v24, %s1381_s22  ;;  %1012 = vrot.lane.b32.xlu1 %v994_v11, %s1381_s22 }
 0xaaa   :  { %1016 = vrot.lane.b32.xlu1 %v1180_v31, %s1381_s22 }
 0xb14   :  { %v1011_v33 = vpop.permute.xlu0 %1010 }
 0xb15   :  { %1023 = vst.msk [vmem:[#allocation8] sm:$0xff] %vm1022_vm5, %v1011_v33 }
 0xb18   :  { %v1015_v23 = vpop.permute.xlu0 %1014  ;;  %v1013_v12 = vpop.permute.xlu1 %1012 }
 0xb19   :  { %1025 = vst.msk [vmem:[#allocation8 + $0x10] sm:$0xff] %vm1022_vm5, %v1015_v23  ;;  %1024 = vst.msk [vmem:[#allocation8 + $0x8] sm:$0xff] %vm1022_vm5, %v1013_v12 }
 0xb1c   :  { %v1017_v13 = vpop.permute.xlu1 %1016 }
 0xb1d   :  { %1026 = vst.msk [vmem:[#allocation8 + $0x18] sm:$0xff] %vm1022_vm5, %v1017_v13 }
 0xb1e   :  { %1348 = shalt.err (!%p1345_p5)
}
 0xb1f   :  { %1038 = dma.vmem_to_hbm [thread:$0]  %s1033_s24, 512, %s1694_s5, [#allocation4], %s1368_s1, %s1368_s1, %s1369_s8  }
 0xb20   :  { %1361 = dma.done.wait [#allocation4], 512  }
 0xb21   :  { %1362 = vsyncadd [#allocation4], 4294966784 }
 0xb22   :  { %1042 = vsyncpa [#allocation3], 1 }
 0xb23   :  { %1043 = vsyncpa [#allocation6], 1 }
 0xb24   :  { %1044 = vsyncpa [#allocation4], 1 }

</bundles_post_ra>
